<compile_context>
chip_gen: v6e
topology: v6e:2x2x1
jax: 0.10.0
libtpu: 0.0.40
codegen_flags: <defaults>
</compile_context>

<pallas_src>
import functools

import jax
import jax.numpy as jnp
from jax.experimental import pallas as pl
from jax.experimental.pallas import tpu as pltpu


def _round_up(x, m):
    return ((x + m - 1) // m) * m


def _mcm_kernel(tgt_ref, cond_ref, w1_ref, b1_ref, w2_ref, b2_ref, w3_ref, b3_ref,
                loss_ref, *, num_classes, pack):
    """One batch tile in packed layout: each row holds `pack` samples x C features."""
    x = cond_ref[...].astype(jnp.float32)                               # [R, P*C]

    # FCNN on the packed layout via block-diagonal expanded weights.
    h1 = jnp.tanh(jnp.dot(x, w1_ref[...],
                          preferred_element_type=jnp.float32) + b1_ref[...])    # [R, P*H]
    h2 = jnp.tanh(jnp.dot(h1, w2_ref[...],
                          preferred_element_type=jnp.float32) + b2_ref[...])    # [R, P*H]
    logits = jnp.dot(h2, w3_ref[...],
                     preferred_element_type=jnp.float32) + b3_ref[...]          # [R, K*P]

    # Cross entropy (reduction='none').  Classes live in contiguous P-lane slabs
    # (class-major), so the reductions below are dense element-wise ops over
    # [R, P] tiles -- no sublane extracts, no cross-lane reduce.
    m = logits[:, 0:pack]
    for k in range(1, num_classes):
        m = jnp.maximum(m, logits[:, k * pack:(k + 1) * pack])
    s = jnp.zeros_like(m)
    for k in range(num_classes):
        s = s + jnp.exp(logits[:, k * pack:(k + 1) * pack] - m)
    lse = m + jnp.log(s)                                                # [R, P]

    tgt = tgt_ref[...]                                                  # [R, P] int32
    picked = jnp.zeros_like(m)
    for k in range(num_classes):
        picked = picked + jnp.where(tgt == k, logits[:, k * pack:(k + 1) * pack], 0.0)

    loss_ref[...] = lse - picked                                        # [R, P]


def multiclass_mask_forward(x, cond_inp, params, *, tile_n=65536):
    """x: [N, dim] (column 0 holds the class label), cond_inp: [N, num_cond]."""
    w1, b1, w2, b2, w3, b3 = params            # w: [in, out], b: [out]
    n, num_cond = cond_inp.shape
    hidden = w1.shape[1]
    num_classes = w3.shape[1]

    assert num_cond >= 1 and 128 % num_cond == 0, "num_cond must divide 128"
    pack = 128 // num_cond                      # samples per 128-lane row
    assert pack * hidden <= 2048, "expanded W2 would be too large for VMEM"

    # Targets: only column 0 of x is used (matches torch .long() truncation for
    # non-negative integer-valued floats).
    targets = x[:, 0].astype(jnp.int32)

    # Pack the batch: [N, C] -> [N/P, P*C] is a pure bitcast reshape (no HBM pass).
    # Only a non-multiple-of-P batch pays a small pad copy.
    n_pad = _round_up(n, pack)
    if n_pad != n:
        cond_inp = jnp.pad(cond_inp, ((0, n_pad - n), (0, 0)))
        targets = jnp.pad(targets, (0, n_pad - n))
    rows = n_pad // pack
    cond2d = cond_inp.reshape(rows, pack * num_cond)     # [rows, 128]
    tgt2d = targets.reshape(rows, pack)                  # [rows, P] int32

    # Batch tile (in rows of `pack` samples).  Large tiles amortize the ~0.35us
    # fixed per-grid-step cost; cap rows so the cond block stays <= ~8 MiB; and
    # ensure >= 2 grid steps whenever possible so both v7x TCs get work.
    default_rows = max(8, min(_round_up(max(tile_n // pack, 1), 8), 16384))
    if rows >= 16:
        tile_rows = min(default_rows, _round_up(pl.cdiv(rows, 2), 8))
    else:
        tile_rows = rows                                 # tiny batch: single full block
    num_tiles = pl.cdiv(rows, tile_rows)                 # partial last block is masked

    # Block-diagonal expanded weights (tiny, built once, resident in VMEM).
    #   W1e[g*C + c, g'*H + j] = w1[c, j] * delta(g, g')
    #   W2e[g*H + i, g'*H + j] = w2[i, j] * delta(g, g')
    #   W3e[g*H + j, k*P + g'] = w3[j, k] * delta(g, g')   (class-major output)
    eye = jnp.eye(pack, dtype=jnp.float32)
    w1e = jnp.einsum('cj,gh->gchj', w1.astype(jnp.float32), eye
                     ).reshape(pack * num_cond, pack * hidden)
    w2e = jnp.einsum('ij,gh->gihj', w2.astype(jnp.float32), eye
                     ).reshape(pack * hidden, pack * hidden)
    w3e = jnp.einsum('jk,gh->gjkh', w3.astype(jnp.float32), eye
                     ).reshape(pack * hidden, num_classes * pack)
    b1e = jnp.tile(b1.astype(jnp.float32), pack).reshape(1, pack * hidden)
    b2e = jnp.tile(b2.astype(jnp.float32), pack).reshape(1, pack * hidden)
    b3e = jnp.repeat(b3.astype(jnp.float32), pack).reshape(1, num_classes * pack)

    kern = functools.partial(_mcm_kernel, num_classes=num_classes, pack=pack)
    batch_map = lambda i: (i, 0)        # batch tiles march along the row axis
    resident = lambda i: (0, 0)         # weights: same block every step -> stay in VMEM

    loss2d = pl.pallas_call(
        kern,
        out_shape=jax.ShapeDtypeStruct((rows, pack), jnp.float32),
        grid=(num_tiles,),
        in_specs=[
            pl.BlockSpec((tile_rows, pack), batch_map),                   # targets
            pl.BlockSpec((tile_rows, pack * num_cond), batch_map),        # cond (packed)
            pl.BlockSpec((pack * num_cond, pack * hidden), resident),     # W1_exp
            pl.BlockSpec((1, pack * hidden), resident),                   # b1_exp
            pl.BlockSpec((pack * hidden, pack * hidden), resident),       # W2_exp
            pl.BlockSpec((1, pack * hidden), resident),                   # b2_exp
            pl.BlockSpec((pack * hidden, num_classes * pack), resident),  # W3_exp
            pl.BlockSpec((1, num_classes * pack), resident),              # b3_exp
        ],
        out_specs=pl.BlockSpec((tile_rows, pack), batch_map),
        compiler_params=pltpu.CompilerParams(
            dimension_semantics=("parallel",),          # shard batch over TCs (v7x)
            vmem_limit_bytes=48 * 1024 * 1024,          # safe on v7x's 64 MiB VMEM
        ),
    )(tgt2d, cond2d, w1e, b1e, w2e, b2e, w3e, b3e)

    return loss2d.reshape(-1)[:n]                                        # [N]


def init_params(key, num_cond, hidden_dim, num_classes):
    """Deterministic init mimicking torch.nn.Linear defaults U(-1/sqrt(fan_in), +)."""
    ks = jax.random.split(key, 6)

    def linear(kw, kb, fan_in, fan_out):
        bound = 1.0 / jnp.sqrt(jnp.float32(fan_in))
        w = jax.random.uniform(kw, (fan_in, fan_out), jnp.float32, -bound, bound)
        b = jax.random.uniform(kb, (fan_out,), jnp.float32, -bound, bound)
        return w, b

    w1, b1 = linear(ks[0], ks[1], num_cond, hidden_dim)
    w2, b2 = linear(ks[2], ks[3], hidden_dim, hidden_dim)
    w3, b3 = linear(ks[4], ks[5], hidden_dim, num_classes)
    return (w1, b1, w2, b2, w3, b3)


def reference_forward(x, cond_inp, params):
    """Pure-JAX reference (matches PyTorch semantics)."""
    w1, b1, w2, b2, w3, b3 = params
    h1 = jnp.tanh(cond_inp @ w1 + b1)
    h2 = jnp.tanh(h1 @ w2 + b2)
    logits = h2 @ w3 + b3
    tgt = x[:, 0].astype(jnp.int32)
    log_z = jax.scipy.special.logsumexp(logits, axis=-1)
    picked = jnp.take_along_axis(logits, tgt[:, None], axis=-1)[:, 0]
    return log_z - picked


def _make_inputs(key, n, dim, num_cond, num_classes):
    k_x, k_c = jax.random.split(key)
    tgt = jax.random.randint(k_x, (n,), 0, num_classes)
    x = tgt.astype(jnp.float32)[:, None] * jnp.ones((1, dim), jnp.float32)
    cond = jax.random.normal(k_c, (n, num_cond), jnp.float32)
    return x, cond


if __name__ == "__main__":
    # Shapes consistent with the module: dim=1, hidden_dim=8, num_cond=4,
    # num_classes=2, small batch N=8.
    N, DIM, NUM_COND, HIDDEN, NUM_CLASSES = 8, 1, 4, 8, 2

    key = jax.random.PRNGKey(0)
    k_d, k_p, k_d2, k_d3 = jax.random.split(key, 4)
    params = init_params(k_p, NUM_COND, HIDDEN, NUM_CLASSES)

    x, cond_inp = _make_inputs(k_d, N, DIM, NUM_COND, NUM_CLASSES)
    lossv = multiclass_mask_forward(x, cond_inp, params)
    jax.block_until_ready(lossv)
    ref = reference_forward(x, cond_inp, params)
    assert lossv.shape == (N,)
    assert jnp.allclose(lossv, ref, atol=3e-5, rtol=3e-4), (lossv, ref)

    # Multi-tile path + batch not a multiple of the pack factor (pad fallback).
    N2 = 1000
    x2, cond2 = _make_inputs(k_d2, N2, DIM, NUM_COND, NUM_CLASSES)
    loss2 = multiclass_mask_forward(x2, cond2, params)
    jax.block_until_ready(loss2)
    ref2 = reference_forward(x2, cond2, params)
    assert loss2.shape == (N2,)
    assert jnp.allclose(loss2, ref2, atol=3e-5, rtol=3e-4), (loss2, ref2)

    # Multi-tile path with batch a multiple of the pack factor (pure free-reshape path).
    N3 = 4096
    x3, cond3 = _make_inputs(k_d3, N3, DIM, NUM_COND, NUM_CLASSES)
    loss3 = multiclass_mask_forward(x3, cond3, params)
    jax.block_until_ready(loss3)
    ref3 = reference_forward(x3, cond3, params)
    assert loss3.shape == (N3,)
    assert jnp.allclose(loss3, ref3, atol=3e-5, rtol=3e-4), (loss3, ref3)

    print("KERNEL_OK")
</pallas_src>

<mosaic_0001>
module attributes {stable_mosaic.version = 11 : i64} {
  func.func @_mcm_kernel(%arg0: i32, %arg1: memref<1x32xi32, #tpu.memory_space<vmem>>, %arg2: memref<1x128xf32, #tpu.memory_space<vmem>>, %arg3: memref<128x256xf32, #tpu.memory_space<vmem>>, %arg4: memref<1x256xf32, #tpu.memory_space<vmem>>, %arg5: memref<256x256xf32, #tpu.memory_space<vmem>>, %arg6: memref<1x256xf32, #tpu.memory_space<vmem>>, %arg7: memref<256x64xf32, #tpu.memory_space<vmem>>, %arg8: memref<1x64xf32, #tpu.memory_space<vmem>>, %arg9: memref<1x32xf32, #tpu.memory_space<vmem>>) attributes {dimension_semantics = [#tpu.dimension_semantics<parallel>], iteration_bounds = array<i64: 1>, scalar_prefetch = 0 : i64, scratch_operands = 0 : i64, tpu.core_type = #tpu.core_type<tc>, window_params = [{transform_indices = @transform_0, window_bounds = array<i64: 1, 32>}, {transform_indices = @transform_1, window_bounds = array<i64: 1, 128>}, {pipeline_mode = #tpu.pipeline_mode<synchronous>, transform_indices = @transform_2, window_bounds = array<i64: 128, 256>}, {pipeline_mode = #tpu.pipeline_mode<synchronous>, transform_indices = @transform_3, window_bounds = array<i64: 1, 256>}, {pipeline_mode = #tpu.pipeline_mode<synchronous>, transform_indices = @transform_4, window_bounds = array<i64: 256, 256>}, {pipeline_mode = #tpu.pipeline_mode<synchronous>, transform_indices = @transform_5, window_bounds = array<i64: 1, 256>}, {pipeline_mode = #tpu.pipeline_mode<synchronous>, transform_indices = @transform_6, window_bounds = array<i64: 256, 64>}, {pipeline_mode = #tpu.pipeline_mode<synchronous>, transform_indices = @transform_7, window_bounds = array<i64: 1, 64>}, {transform_indices = @transform_8, window_bounds = array<i64: 1, 32>}]} {
    %c0 = arith.constant 0 : index
    %c0_0 = arith.constant 0 : index
    %0 = vector.load %arg2[%c0, %c0_0] : memref<1x128xf32, #tpu.memory_space<vmem>>, vector<1x128xf32>
    %c0_1 = arith.constant 0 : index
    %c0_2 = arith.constant 0 : index
    %1 = vector.load %arg3[%c0_1, %c0_2] : memref<128x256xf32, #tpu.memory_space<vmem>>, vector<128x256xf32>
    %cst = arith.constant dense<0.000000e+00> : vector<1x256xf32>
    %2 = tpu.matmul %0, %1, %cst {dimension_numbers = #tpu.dot_dimension_numbers<[1], [0], [0], [1], [0, 0, 1, 1], [], []>} : vector<1x128xf32>, vector<128x256xf32>, vector<1x256xf32> -> vector<1x256xf32>
    %c0_3 = arith.constant 0 : index
    %c0_4 = arith.constant 0 : index
    %3 = vector.load %arg4[%c0_3, %c0_4] : memref<1x256xf32, #tpu.memory_space<vmem>>, vector<1x256xf32>
    %4 = arith.addf %2, %3 : vector<1x256xf32>
    %5 = math.tanh %4 : vector<1x256xf32>
    %c0_5 = arith.constant 0 : index
    %c0_6 = arith.constant 0 : index
    %6 = vector.load %arg5[%c0_5, %c0_6] : memref<256x256xf32, #tpu.memory_space<vmem>>, vector<256x256xf32>
    %cst_7 = arith.constant dense<0.000000e+00> : vector<1x256xf32>
    %7 = tpu.matmul %5, %6, %cst_7 {dimension_numbers = #tpu.dot_dimension_numbers<[1], [0], [0], [1], [0, 0, 1, 1], [], []>} : vector<1x256xf32>, vector<256x256xf32>, vector<1x256xf32> -> vector<1x256xf32>
    %c0_8 = arith.constant 0 : index
    %c0_9 = arith.constant 0 : index
    %8 = vector.load %arg6[%c0_8, %c0_9] : memref<1x256xf32, #tpu.memory_space<vmem>>, vector<1x256xf32>
    %9 = arith.addf %7, %8 : vector<1x256xf32>
    %10 = math.tanh %9 : vector<1x256xf32>
    %c0_10 = arith.constant 0 : index
    %c0_11 = arith.constant 0 : index
    %11 = vector.load %arg7[%c0_10, %c0_11] : memref<256x64xf32, #tpu.memory_space<vmem>>, vector<256x64xf32>
    %cst_12 = arith.constant dense<0.000000e+00> : vector<1x64xf32>
    %12 = tpu.matmul %10, %11, %cst_12 {dimension_numbers = #tpu.dot_dimension_numbers<[1], [0], [0], [1], [0, 0, 1, 1], [], []>} : vector<1x256xf32>, vector<256x64xf32>, vector<1x64xf32> -> vector<1x64xf32>
    %c0_13 = arith.constant 0 : index
    %c0_14 = arith.constant 0 : index
    %13 = vector.load %arg8[%c0_13, %c0_14] : memref<1x64xf32, #tpu.memory_space<vmem>>, vector<1x64xf32>
    %14 = arith.addf %12, %13 : vector<1x64xf32>
    %15 = vector.extract_strided_slice %14 {offsets = [0, 0], sizes = [1, 32], strides = [1, 1]} : vector<1x64xf32> to vector<1x32xf32>
    %16 = vector.extract_strided_slice %14 {offsets = [0, 32], sizes = [1, 32], strides = [1, 1]} : vector<1x64xf32> to vector<1x32xf32>
    %17 = arith.maximumf %15, %16 : vector<1x32xf32>
    %cst_15 = arith.constant 0.000000e+00 : f32
    %18 = vector.broadcast %cst_15 : f32 to vector<1x32xf32>
    %19 = vector.extract_strided_slice %14 {offsets = [0, 0], sizes = [1, 32], strides = [1, 1]} : vector<1x64xf32> to vector<1x32xf32>
    %20 = arith.subf %19, %17 : vector<1x32xf32>
    %21 = math.exp %20 : vector<1x32xf32>
    %22 = arith.addf %18, %21 : vector<1x32xf32>
    %23 = vector.extract_strided_slice %14 {offsets = [0, 32], sizes = [1, 32], strides = [1, 1]} : vector<1x64xf32> to vector<1x32xf32>
    %24 = arith.subf %23, %17 : vector<1x32xf32>
    %25 = math.exp %24 : vector<1x32xf32>
    %26 = arith.addf %22, %25 : vector<1x32xf32>
    %27 = math.log %26 : vector<1x32xf32>
    %28 = arith.addf %17, %27 : vector<1x32xf32>
    %c0_16 = arith.constant 0 : index
    %c0_17 = arith.constant 0 : index
    %29 = vector.load %arg1[%c0_16, %c0_17] : memref<1x32xi32, #tpu.memory_space<vmem>>, vector<1x32xi32>
    %cst_18 = arith.constant 0.000000e+00 : f32
    %30 = vector.broadcast %cst_18 : f32 to vector<1x32xf32>
    %c0_i32 = arith.constant 0 : i32
    %31 = vector.broadcast %c0_i32 : i32 to vector<1x32xi32>
    %32 = arith.cmpi eq, %29, %31 : vector<1x32xi32>
    %33 = vector.extract_strided_slice %14 {offsets = [0, 0], sizes = [1, 32], strides = [1, 1]} : vector<1x64xf32> to vector<1x32xf32>
    %cst_19 = arith.constant 0.000000e+00 : f32
    %34 = vector.broadcast %cst_19 : f32 to vector<1x32xf32>
    %35 = arith.select %32, %33, %34 : vector<1x32xi1>, vector<1x32xf32>
    %36 = arith.addf %30, %35 : vector<1x32xf32>
    %c1_i32 = arith.constant 1 : i32
    %37 = vector.broadcast %c1_i32 : i32 to vector<1x32xi32>
    %38 = arith.cmpi eq, %29, %37 : vector<1x32xi32>
    %39 = vector.extract_strided_slice %14 {offsets = [0, 32], sizes = [1, 32], strides = [1, 1]} : vector<1x64xf32> to vector<1x32xf32>
    %cst_20 = arith.constant 0.000000e+00 : f32
    %40 = vector.broadcast %cst_20 : f32 to vector<1x32xf32>
    %41 = arith.select %38, %39, %40 : vector<1x32xi1>, vector<1x32xf32>
    %42 = arith.addf %36, %41 : vector<1x32xf32>
    %43 = arith.subf %28, %42 : vector<1x32xf32>
    %c0_21 = arith.constant 0 : index
    %c0_22 = arith.constant 0 : index
    %44 = vector.load %arg9[%c0_21, %c0_22] : memref<1x32xf32, #tpu.memory_space<vmem>>, vector<1x32xf32>
    tpu.vector_store %arg9[%c0_21, %c0_22], %43 {strides = array<i32>} : memref<1x32xf32, #tpu.memory_space<vmem>>, vector<1x32xf32>,
    return
  }
  func.func @transform_0(%arg0: i32) -> (i32, i32) {
    %c0_i32 = arith.constant 0 : i32
    %c0_i32_0 = arith.constant 0 : i32
    return %arg0, %c0_i32 : i32, i32
  }
  func.func @transform_1(%arg0: i32) -> (i32, i32) {
    %c0_i32 = arith.constant 0 : i32
    %c0_i32_0 = arith.constant 0 : i32
    return %arg0, %c0_i32 : i32, i32
  }
  func.func @transform_2(%arg0: i32) -> (i32, i32) {
    %c0_i32 = arith.constant 0 : i32
    %c0_i32_0 = arith.constant 0 : i32
    %c0_i32_1 = arith.constant 0 : i32
    return %c0_i32, %c0_i32_0 : i32, i32
  }
  func.func @transform_3(%arg0: i32) -> (i32, i32) {
    %c0_i32 = arith.constant 0 : i32
    %c0_i32_0 = arith.constant 0 : i32
    %c0_i32_1 = arith.constant 0 : i32
    return %c0_i32, %c0_i32_0 : i32, i32
  }
  func.func @transform_4(%arg0: i32) -> (i32, i32) {
    %c0_i32 = arith.constant 0 : i32
    %c0_i32_0 = arith.constant 0 : i32
    %c0_i32_1 = arith.constant 0 : i32
    return %c0_i32, %c0_i32_0 : i32, i32
  }
  func.func @transform_5(%arg0: i32) -> (i32, i32) {
    %c0_i32 = arith.constant 0 : i32
    %c0_i32_0 = arith.constant 0 : i32
    %c0_i32_1 = arith.constant 0 : i32
    return %c0_i32, %c0_i32_0 : i32, i32
  }
  func.func @transform_6(%arg0: i32) -> (i32, i32) {
    %c0_i32 = arith.constant 0 : i32
    %c0_i32_0 = arith.constant 0 : i32
    %c0_i32_1 = arith.constant 0 : i32
    return %c0_i32, %c0_i32_0 : i32, i32
  }
  func.func @transform_7(%arg0: i32) -> (i32, i32) {
    %c0_i32 = arith.constant 0 : i32
    %c0_i32_0 = arith.constant 0 : i32
    %c0_i32_1 = arith.constant 0 : i32
    return %c0_i32, %c0_i32_0 : i32, i32
  }
  func.func @transform_8(%arg0: i32) -> (i32, i32) {
    %c0_i32 = arith.constant 0 : i32
    %c0_i32_0 = arith.constant 0 : i32
    return %arg0, %c0_i32 : i32, i32
  }
}

</mosaic_0001>

<bundles_post_ra>
// kernel: tpu_custom_call.1
= control target key start
LH: loop header
LB: loop body
LE: loop exit
PB: predicated region body
PF: predicated region fallthrough
CT: control target
= control target key end

     0   :  { %13 = vsyncpa [#allocation3], 0  ;;  %s852_s0 = inlined_call_operand.vmem [shape: s32[1,32], index: 0, kind: input, shape index: {}]   ;;  %s853_s1 = inlined_call_operand.vmem [shape: f32[1,128], index: 1, kind: input, shape index: {}]   ;;  %s854_s2 = inlined_call_operand.vmem [shape: f32[128,256], index: 2, kind: input, shape index: {}]   ;;  %s855_s3 = inlined_call_operand.vmem [shape: f32[1,256], index: 3, kind: input, shape index: {}]   ;;  %s856_s4 = inlined_call_operand.hbm [shape: f32[256,256], index: 4, kind: input, shape index: {}]   ;;  %s857_s5 = inlined_call_operand.vmem [shape: f32[1,256], index: 5, kind: input, shape index: {}]   ;;  %s858_s6 = inlined_call_operand.vmem [shape: f32[256,64], index: 6, kind: input, shape index: {}]   ;;  %s859_s7 = inlined_call_operand.vmem [shape: f32[1,64], index: 7, kind: input, shape index: {}]   ;;  %s860_s8 = inlined_call_operand.hbm [shape: f32[1,32], index: 8, kind: output, shape index: {}]  }
   0x1   :  { %14 = vsyncpa [#allocation4], 0  ;;  %s581_s27 = smov [#allocation2]  }
   0x2   :  { %s28_s28 = sshll.u32 %s581_s27, 4  ;;  %s29_s28 = int_to_ptr.vmem [resolvable:$true] %s28_s28 }
   0x3   :  { %s545_s29 = scalar_lea.vmem %s29_s28, 8192  ;;  %p550_p1 = scmp.lt.s32.totalorder %s29_s28, %s29_s28 }
   0x4   :  { %p546_p0 = scmp.ne.s32.totalorder %s29_s28, %s545_s29  ;;  %p551_p2 = scmp.lt.s32.totalorder %s545_s29, %s545_s29 }
   0x6   :  { %p552_p3 = por %p551_p2, %p550_p1 }
   0x8   :  { %p553_p4 = pnand %p552_p3, %p546_p0 }
   0xa   :  { %556 = shalt.err (!%p553_p4)
}
   0xb   :  { %s582_s30 = smov 256   ;;  %s583_s9 = smov 16  }
   0xc   :  { %34 = dma.hbm_to_vmem [thread:$0]  %s856_s4, 8192, %s29_s28, [#allocation3], %s582_s30, %s582_s30, %s583_s9  }
   0xd   :  { %577 = dma.done.wait [#allocation3], 8192  }
   0xe   :  { %578 = vsyncadd [#allocation3], 4294959104  ;;  %v584_v0 = vmov 0.0   ;;  %v76_v1 = vld [vmem:[%s854_s2 + $0xf8] sm:$0xff]  ;;  %v75_v2 = vld [vmem:[%s854_s2 + $0xf0] sm:$0xff]  ;;  %s586_s23 = smov 32  }
   0xf   :  { %153 = vmatprep.mubr.f32.mxu0 %v584_v0  ;;  %v74_v3 = vld [vmem:[%s854_s2 + $0xe8] sm:$0xff]  ;;  %89 = vmatprep.subr.mxu0 %v76_v1  ;;  %v73_v4 = vld [vmem:[%s854_s2 + $0xe0] sm:$0xff]  ;;  %v72_v5 = vld [vmem:[%s854_s2 + $0xd8] sm:$0xff]  ;;  %s588_s25 = smov [#allocation5]   ;;  %vm463_vm2 = vcmask 253952  }
  0x10   :  { %90 = vmatpush1.msra.mxu0 %v75_v2  ;;  %v71_v6 = vld [vmem:[%s854_s2 + $0xd0] sm:$0xff]  ;;  %v70_v7 = vld [vmem:[%s854_s2 + $0xc8] sm:$0xff]  ;;  %v69_v8 = vld [vmem:[%s854_s2 + $0xc0] sm:$0xff]  ;;  %s471_s26 = sshll.u32 %s588_s25, 4  ;;  %s472_s26 = int_to_ptr.vmem [resolvable:$true] %s471_s26 }
  0x11   :  { %91 = vmatprep.subr.mxu0 %v74_v3  ;;  %v68_v9 = vld [vmem:[%s854_s2 + $0xb8] sm:$0xff]  ;;  %v67_v10 = vld [vmem:[%s854_s2 + $0xb0] sm:$0xff]  ;;  %v66_v11 = vld [vmem:[%s854_s2 + $0xa8] sm:$0xff]  ;;  %s557_s27 = scalar_lea.vmem %s472_s26, 16  ;;  %s561_s28 = scalar_lea.vmem %s472_s26, 32 }
  0x12   :  { %92 = vmatpush1.msra.mxu0 %v73_v4  ;;  %v65_v12 = vld [vmem:[%s854_s2 + $0xa0] sm:$0xff]  ;;  %v64_v13 = vld [vmem:[%s854_s2 + $0x98] sm:$0xff]  ;;  %v63_v14 = vld [vmem:[%s854_s2 + $0x90] sm:$0xff]  ;;  %p558_p5 = scmp.ne.s32.totalorder %s472_s26, %s557_s27  ;;  %p562_p6 = scmp.lt.s32.totalorder %s472_s26, %s472_s26 }
  0x13   :  { %93 = vmatprep.subr.mxu0 %v72_v5  ;;  %v193_v15 = vld [vmem:[#allocation2 + $0xf8] sm:$0xff]  ;;  %v192_v16 = vld [vmem:[#allocation2 + $0xf0] sm:$0xff]  ;;  %v191_v17 = vld [vmem:[#allocation2 + $0xe8] sm:$0xff]  ;;  %p563_p7 = scmp.lt.s32.totalorder %s561_s28, %s557_s27 }
  0x14   :  { %94 = vmatpush1.msra.mxu0 %v71_v6  ;;  %v62_v18 = vld [vmem:[%s854_s2 + $0x88] sm:$0xff]  ;;  %238 = vmatprep.subr.mxu1 %v193_v15  ;;  %v190_v19 = vld [vmem:[#allocation2 + $0xe0] sm:$0xff]  ;;  %v189_v21 = vld [vmem:[#allocation2 + $0xd8] sm:$0xff] }
  0x15   :  { %95 = vmatprep.subr.mxu0 %v70_v7  ;;  %v61_v20 = vld [vmem:[%s854_s2 + $0x80] sm:$0xff]  ;;  %239 = vmatpush1.msra.mxu1 %v192_v16  ;;  %v60_v22 = vld [vmem:[%s854_s2 + $0x78] sm:$0xff]  ;;  %v188_v23 = vld [vmem:[#allocation2 + $0xd0] sm:$0xff]  ;;  %p564_p8 = por %p563_p7, %p562_p6 }
  0x16   :  { %96 = vmatpush1.msra.mxu0 %v69_v8  ;;  %240 = vmatprep.subr.mxu1 %v191_v17  ;;  %v59_v24 = vld [vmem:[%s854_s2 + $0x70] sm:$0xff]  ;;  %v187_v25 = vld [vmem:[#allocation2 + $0xc8] sm:$0xff]  ;;  %v186_v27 = vld [vmem:[#allocation2 + $0xc0] sm:$0xff] }
  0x17   :  { %97 = vmatprep.subr.mxu0 %v68_v9  ;;  %241 = vmatpush1.msra.mxu1 %v190_v19  ;;  %v58_v26 = vld [vmem:[%s854_s2 + $0x68] sm:$0xff]  ;;  %v57_v28 = vld [vmem:[%s854_s2 + $0x60] sm:$0xff]  ;;  %v185_v29 = vld [vmem:[#allocation2 + $0xb8] sm:$0xff]  ;;  %p565_p9 = pnand %p564_p8, %p558_p5 }
  0x18   :  { %98 = vmatpush1.msra.mxu0 %v67_v10  ;;  %242 = vmatprep.subr.mxu1 %v189_v21  ;;  %v56_v30 = vld [vmem:[%s854_s2 + $0x58] sm:$0xff]  ;;  %v184_v31 = vld [vmem:[#allocation2 + $0xb0] sm:$0xff]  ;;  %v183_v33 = vld [vmem:[#allocation2 + $0xa8] sm:$0xff] }
  0x19   :  { %99 = vmatprep.subr.mxu0 %v66_v11  ;;  %243 = vmatpush1.msra.mxu1 %v188_v23  ;;  %v55_v32 = vld [vmem:[%s854_s2 + $0x50] sm:$0xff]  ;;  %v54_v34 = vld [vmem:[%s854_s2 + $0x48] sm:$0xff]  ;;  %v182_v35 = vld [vmem:[#allocation2 + $0xa0] sm:$0xff] }
  0x1a   :  { %100 = vmatpush1.msra.mxu0 %v65_v12  ;;  %244 = vmatprep.subr.mxu1 %v187_v25  ;;  %v53_v36 = vld [vmem:[%s854_s2 + $0x40] sm:$0xff]  ;;  %v181_v37 = vld [vmem:[#allocation2 + $0x98] sm:$0xff]  ;;  %v180_v39 = vld [vmem:[#allocation2 + $0x90] sm:$0xff] }
  0x1b   :  { %101 = vmatprep.subr.mxu0 %v64_v13  ;;  %245 = vmatpush1.msra.mxu1 %v186_v27  ;;  %v52_v38 = vld [vmem:[%s854_s2 + $0x38] sm:$0xff]  ;;  %v51_v40 = vld [vmem:[%s854_s2 + $0x30] sm:$0xff]  ;;  %v179_v41 = vld [vmem:[#allocation2 + $0x88] sm:$0xff] }
  0x1c   :  { %102 = vmatpush1.msra.mxu0 %v63_v14  ;;  %246 = vmatprep.subr.mxu1 %v185_v29  ;;  %v50_v42 = vld [vmem:[%s854_s2 + $0x28] sm:$0xff]  ;;  %v178_v43 = vld [vmem:[#allocation2 + $0x80] sm:$0xff]  ;;  %v177_v45 = vld [vmem:[#allocation2 + $0x78] sm:$0xff] }
  0x1d   :  { %103 = vmatprep.subr.mxu0 %v62_v18  ;;  %247 = vmatpush1.msra.mxu1 %v184_v31  ;;  %v49_v44 = vld [vmem:[%s854_s2 + $0x20] sm:$0xff]  ;;  %v48_v46 = vld [vmem:[%s854_s2 + $0x18] sm:$0xff]  ;;  %v176_v47 = vld [vmem:[#allocation2 + $0x70] sm:$0xff] }
  0x1e   :  { %104 = vmatpush1.msra.mxu0 %v61_v20  ;;  %248 = vmatprep.subr.mxu1 %v183_v33  ;;  %v47_v48 = vld [vmem:[%s854_s2 + $0x10] sm:$0xff]  ;;  %v175_v49 = vld [vmem:[#allocation2 + $0x68] sm:$0xff]  ;;  %v174_v51 = vld [vmem:[#allocation2 + $0x60] sm:$0xff] }
  0x1f   :  { %105 = vmatprep.subr.mxu0 %v60_v22  ;;  %249 = vmatpush1.msra.mxu1 %v182_v35  ;;  %v46_v50 = vld [vmem:[%s854_s2 + $0x8] sm:$0xff]  ;;  %v45_v52 = vld [vmem:[%s854_s2] sm:$0xff]  ;;  %v173_v53 = vld [vmem:[#allocation2 + $0x58] sm:$0xff] }
  0x20   :  { %106 = vmatpush1.msra.mxu0 %v59_v24  ;;  %250 = vmatprep.subr.mxu1 %v181_v37  ;;  %v44_v54 = vld [vmem:[%s853_s1] sm:$0x1]  ;;  %v172_v55 = vld [vmem:[#allocation2 + $0x50] sm:$0xff]  ;;  %v171_v56 = vld [vmem:[#allocation2 + $0x48] sm:$0xff] }
  0x21   :  { %107 = vmatprep.subr.mxu0 %v58_v26  ;;  %251 = vmatpush1.msra.mxu1 %v180_v39  ;;  %v170_v57 = vld [vmem:[#allocation2 + $0x40] sm:$0xff]  ;;  %v169_v58 = vld [vmem:[#allocation2 + $0x38] sm:$0xff]  ;;  %v168_v59 = vld [vmem:[#allocation2 + $0x30] sm:$0xff] }
  0x22   :  { %108 = vmatpush1.msra.mxu0 %v57_v28  ;;  %252 = vmatprep.subr.mxu1 %v179_v41  ;;  %v167_v60 = vld [vmem:[#allocation2 + $0x28] sm:$0xff]  ;;  %v166_v61 = vld [vmem:[#allocation2 + $0x20] sm:$0xff]  ;;  %v165_v62 = vld [vmem:[#allocation2 + $0x18] sm:$0xff] }
  0x23   :  { %109 = vmatprep.subr.mxu0 %v56_v30  ;;  %253 = vmatpush1.msra.mxu1 %v178_v43  ;;  %v164_v63 = vld [vmem:[#allocation2 + $0x10] sm:$0xff]  ;;  %v163_v0 = vld [vmem:[#allocation2 + $0x8] sm:$0xff]  ;;  %v162_v1 = vld [vmem:[#allocation2] sm:$0xff] }
  0x24   :  { %110 = vmatpush1.msra.mxu0 %v55_v32  ;;  %254 = vmatprep.subr.mxu1 %v177_v45  ;;  %v225_v2 = vld [vmem:[#allocation2 + $0x1f8] sm:$0xff]  ;;  %v224_v3 = vld [vmem:[#allocation2 + $0x1f0] sm:$0xff]  ;;  %v223_v4 = vld [vmem:[#allocation2 + $0x1e8] sm:$0xff] }
  0x25   :  { %111 = vmatprep.subr.mxu0 %v54_v34  ;;  %255 = vmatpush1.msra.mxu1 %v176_v47  ;;  %v222_v5 = vld [vmem:[#allocation2 + $0x1e0] sm:$0xff]  ;;  %v221_v6 = vld [vmem:[#allocation2 + $0x1d8] sm:$0xff]  ;;  %v220_v7 = vld [vmem:[#allocation2 + $0x1d0] sm:$0xff] }
  0x26   :  { %112 = vmatpush1.msra.mxu0 %v53_v36  ;;  %256 = vmatprep.subr.mxu1 %v175_v49  ;;  %v219_v8 = vld [vmem:[#allocation2 + $0x1c8] sm:$0xff]  ;;  %v218_v9 = vld [vmem:[#allocation2 + $0x1c0] sm:$0xff]  ;;  %v217_v10 = vld [vmem:[#allocation2 + $0x1b8] sm:$0xff] }
  0x27   :  { %113 = vmatprep.subr.mxu0 %v52_v38  ;;  %257 = vmatpush1.msra.mxu1 %v174_v51  ;;  %v216_v11 = vld [vmem:[#allocation2 + $0x1b0] sm:$0xff]  ;;  %v215_v12 = vld [vmem:[#allocation2 + $0x1a8] sm:$0xff]  ;;  %v214_v13 = vld [vmem:[#allocation2 + $0x1a0] sm:$0xff] }
  0x28   :  { %114 = vmatpush1.msra.mxu0 %v51_v40  ;;  %258 = vmatprep.subr.mxu1 %v173_v53  ;;  %v213_v14 = vld [vmem:[#allocation2 + $0x198] sm:$0xff]  ;;  %v212_v15 = vld [vmem:[#allocation2 + $0x190] sm:$0xff]  ;;  %v211_v16 = vld [vmem:[#allocation2 + $0x188] sm:$0xff] }
  0x29   :  { %115 = vmatprep.subr.mxu0 %v50_v42  ;;  %259 = vmatpush1.msra.mxu1 %v172_v55  ;;  %v210_v17 = vld [vmem:[#allocation2 + $0x180] sm:$0xff]  ;;  %v209_v18 = vld [vmem:[#allocation2 + $0x178] sm:$0xff]  ;;  %v208_v19 = vld [vmem:[#allocation2 + $0x170] sm:$0xff] }
  0x2a   :  { %116 = vmatpush1.msra.mxu0 %v49_v44  ;;  %260 = vmatprep.subr.mxu1 %v171_v56  ;;  %v207_v20 = vld [vmem:[#allocation2 + $0x168] sm:$0xff]  ;;  %v206_v21 = vld [vmem:[#allocation2 + $0x160] sm:$0xff]  ;;  %v205_v22 = vld [vmem:[#allocation2 + $0x158] sm:$0xff] }
  0x2b   :  { %117 = vmatprep.subr.mxu0 %v48_v46  ;;  %261 = vmatpush1.msra.mxu1 %v170_v57  ;;  %v204_v23 = vld [vmem:[#allocation2 + $0x150] sm:$0xff]  ;;  %v203_v24 = vld [vmem:[#allocation2 + $0x148] sm:$0xff]  ;;  %v202_v25 = vld [vmem:[#allocation2 + $0x140] sm:$0xff]  ;;  %v79_v46 = vlaneseq }
  0x2c   :  { %118 = vmatpush1.msra.mxu0 %v47_v48  ;;  %262 = vmatprep.subr.mxu1 %v169_v58  ;;  %v201_v26 = vld [vmem:[#allocation2 + $0x138] sm:$0xff]  ;;  %v200_v27 = vld [vmem:[#allocation2 + $0x130] sm:$0xff]  ;;  %v199_v28 = vld [vmem:[#allocation2 + $0x128] sm:$0xff] }
  0x2d   :  { %119 = vmatprep.subr.mxu0 %v46_v50  ;;  %263 = vmatpush1.msra.mxu1 %v168_v59  ;;  %v198_v29 = vld [vmem:[#allocation2 + $0x120] sm:$0xff]  ;;  %v197_v30 = vld [vmem:[#allocation2 + $0x118] sm:$0xff]  ;;  %v196_v31 = vld [vmem:[#allocation2 + $0x110] sm:$0xff]  ;;  %v772_v47 = vshrl.u32 %v79_v46, 7 }
  0x2e   :  { %120 = vmatpush1.msra.mxu0 %v45_v52  ;;  %264 = vmatprep.subr.mxu1 %v167_v60  ;;  %v195_v32 = vld [vmem:[#allocation2 + $0x108] sm:$0xff]  ;;  %v194_v33 = vld [vmem:[#allocation2 + $0x100] sm:$0xff]  ;;  %v342_v34 = vld [vmem:[%s858_s6 + $0xf8] sm:$0xff] }
  0x2f   :  { %154 = vmatmul.mubr.f32.vlgmr.msra.gmra.mxu0 %v44_v54  ;;  %265 = vmatpush1.msra.mxu1 %v166_v61  ;;  %v326_v35 = vld [vmem:[%s858_s6 + $0x78] sm:$0xff]  ;;  %v341_v36 = vld [vmem:[%s858_s6 + $0xf0] sm:$0xff]  ;;  %v340_v38 = vld [vmem:[%s858_s6 + $0xe8] sm:$0xff]  ;;  %v81_v48 = vsub.s32 0, %v772_v47  ;;  %v85_v50 = vsub.s32 1, %v772_v47 }
  0x30   :  { %266 = vmatprep.subr.mxu1 %v165_v62  ;;  %480 = vmatprep.subr.mxu0 %v342_v34  ;;  %v325_v37 = vld [vmem:[%s858_s6 + $0x70] sm:$0xff]  ;;  %v324_v39 = vld [vmem:[%s858_s6 + $0x68] sm:$0xff]  ;;  %v339_v40 = vld [vmem:[%s858_s6 + $0xe0] sm:$0xff]  ;;  %v587_v34 = vmov 1966171168  }
  0x31   :  { %267 = vmatpush1.msra.mxu1 %v164_v63  ;;  %481 = vmatpush3.msra.mxu0 %v326_v35  ;;  %v323_v41 = vld [vmem:[%s858_s6 + $0x60] sm:$0xff]  ;;  %v338_v42 = vld [vmem:[%s858_s6 + $0xd8] sm:$0xff]  ;;  %v337_v44 = vld [vmem:[%s858_s6 + $0xd0] sm:$0xff]  ;;  %v444_v35 = vunpack.c.l.s4 %v587_v34 }
  0x32   :  { %268 = vmatprep.subr.mxu1 %v163_v0  ;;  %482 = vmatprep.subr.mxu0 %v341_v36  ;;  %v322_v43 = vld [vmem:[%s858_s6 + $0x58] sm:$0xff]  ;;  %v321_v45 = vld [vmem:[%s858_s6 + $0x50] sm:$0xff]  ;;  %v77_v49 = vld [vmem:[%s855_s3] sm:$0x3] }
  0x33   :  { %269 = vmatpush1.msra.mxu1 %v162_v1  ;;  %483 = vmatpush3.msra.mxu0 %v325_v37  ;;  %v82_v51 = vrot.slane %v77_v49, %v81_v48  ;;  %v86_v52 = vrot.slane %v77_v49, %v85_v50  ;;  %v336_v59 = vld [vmem:[%s858_s6 + $0xc8] sm:$0xff]  ;;  %v335_v61 = vld [vmem:[%s858_s6 + $0xc0] sm:$0xff]  ;;  %v334_v63 = vld [vmem:[%s858_s6 + $0xb8] sm:$0xff]  ;;  %v445_v36 = vunpack.c.0.s8 %v444_v35 }
  0x34   :  { %270 = vmatprep.subr.mxu1 %v225_v2  ;;  %484 = vmatprep.subr.mxu0 %v340_v38  ;;  %v320_v60 = vld [vmem:[%s858_s6 + $0x48] sm:$0xff]  ;;  %v319_v62 = vld [vmem:[%s858_s6 + $0x40] sm:$0xff]  ;;  %v318_v0 = vld [vmem:[%s858_s6 + $0x38] sm:$0xff] }
  0x35   :  { %271 = vmatpush2.msra.mxu1 %v224_v3  ;;  %485 = vmatpush3.msra.mxu0 %v324_v39  ;;  %v333_v1 = vld [vmem:[%s858_s6 + $0xb0] sm:$0xff]  ;;  %v332_v3 = vld [vmem:[%s858_s6 + $0xa8] sm:$0xff]  ;;  %v448_v37 = vsub.s32 %v445_v36, %v772_v47  ;;  %v438_v46 = vld [vmem:[%s852_s0] sm:$0x1] }
  0x36   :  { %272 = vmatprep.subr.mxu1 %v223_v4  ;;  %486 = vmatprep.subr.mxu0 %v339_v40  ;;  %v317_v2 = vld [vmem:[%s858_s6 + $0x30] sm:$0xff]  ;;  %v316_v4 = vld [vmem:[%s858_s6 + $0x28] sm:$0xff]  ;;  %vm442_vm0 = vcmp.eq.s32.totalorder %v438_v46, 1  ;;  %vm439_vm1 = vcmp.eq.s32.totalorder %v438_v46, 0 }
  0x37   :  { %273 = vmatpush2.msra.mxu1 %v222_v5  ;;  %487 = vmatpush3.msra.mxu0 %v323_v41  ;;  %v331_v5 = vld [vmem:[%s858_s6 + $0xa0] sm:$0xff] }
  0x38   :  { %274 = vmatprep.subr.mxu1 %v221_v6  ;;  %488 = vmatprep.subr.mxu0 %v338_v42  ;;  %v315_v6 = vld [vmem:[%s858_s6 + $0x20] sm:$0xff] }
  0x39   :  { %275 = vmatpush2.msra.mxu1 %v220_v7  ;;  %489 = vmatpush3.msra.mxu0 %v322_v43  ;;  %v330_v7 = vld [vmem:[%s858_s6 + $0x98] sm:$0xff] }
  0x3a   :  { %276 = vmatprep.subr.mxu1 %v219_v8  ;;  %490 = vmatprep.subr.mxu0 %v337_v44  ;;  %v314_v8 = vld [vmem:[%s858_s6 + $0x18] sm:$0xff] }
  0x3b   :  { %277 = vmatpush2.msra.mxu1 %v218_v9  ;;  %491 = vmatpush3.msra.mxu0 %v321_v45  ;;  %v329_v9 = vld [vmem:[%s858_s6 + $0x90] sm:$0xff] }
  0x3c   :  { %278 = vmatprep.subr.mxu1 %v217_v10  ;;  %492 = vmatprep.subr.mxu0 %v336_v59  ;;  %v313_v10 = vld [vmem:[%s858_s6 + $0x10] sm:$0xff] }
  0x3d   :  { %279 = vmatpush2.msra.mxu1 %v216_v11  ;;  %493 = vmatpush3.msra.mxu0 %v320_v60  ;;  %v328_v11 = vld [vmem:[%s858_s6 + $0x88] sm:$0xff] }
  0x3e   :  { %280 = vmatprep.subr.mxu1 %v215_v12  ;;  %494 = vmatprep.subr.mxu0 %v335_v61  ;;  %v312_v12 = vld [vmem:[%s858_s6 + $0x8] sm:$0xff] }
  0x3f   :  { %281 = vmatpush2.msra.mxu1 %v214_v13  ;;  %495 = vmatpush3.msra.mxu0 %v319_v62  ;;  %v327_v13 = vld [vmem:[%s858_s6 + $0x80] sm:$0xff] }
  0x40   :  { %282 = vmatprep.subr.mxu1 %v213_v14  ;;  %496 = vmatprep.subr.mxu0 %v334_v63  ;;  %v311_v14 = vld [vmem:[%s858_s6] sm:$0xff] }
  0x41   :  { %283 = vmatpush2.msra.mxu1 %v212_v15  ;;  %497 = vmatpush3.msra.mxu0 %v318_v0  ;;  %v226_v15 = vld [vmem:[%s857_s5] sm:$0x3]  ;;  %s585_s5 = smov 96  }
  0x42   :  { %284 = vmatprep.subr.mxu1 %v211_v16  ;;  %498 = vmatprep.subr.mxu0 %v333_v1  ;;  %v231_v16 = vrot.slane %v226_v15, %v81_v48 }
  0x43   :  { %285 = vmatpush2.msra.mxu1 %v210_v17  ;;  %499 = vmatpush3.msra.mxu0 %v317_v2  ;;  %v235_v17 = vrot.slane %v226_v15, %v85_v50 }
  0x44   :  { %286 = vmatprep.subr.mxu1 %v209_v18  ;;  %500 = vmatprep.subr.mxu0 %v332_v3 }
  0x45   :  { %287 = vmatpush2.msra.mxu1 %v208_v19  ;;  %501 = vmatpush3.msra.mxu0 %v316_v4 }
  0x46   :  { %288 = vmatprep.subr.mxu1 %v207_v20  ;;  %502 = vmatprep.subr.mxu0 %v331_v5 }
  0x47   :  { %289 = vmatpush2.msra.mxu1 %v206_v21  ;;  %503 = vmatpush3.msra.mxu0 %v315_v6 }
  0x48   :  { %290 = vmatprep.subr.mxu1 %v205_v22  ;;  %504 = vmatprep.subr.mxu0 %v330_v7 }
  0x49   :  { %291 = vmatpush2.msra.mxu1 %v204_v23  ;;  %505 = vmatpush3.msra.mxu0 %v314_v8 }
  0x4a   :  { %292 = vmatprep.subr.mxu1 %v203_v24  ;;  %506 = vmatprep.subr.mxu0 %v329_v9 }
  0x4b   :  { %293 = vmatpush2.msra.mxu1 %v202_v25  ;;  %507 = vmatpush3.msra.mxu0 %v313_v10  ;;  %v343_v25 = vld [vmem:[%s859_s7] sm:$0x1] }
  0x4c   :  { %294 = vmatprep.subr.mxu1 %v201_v26  ;;  %508 = vmatprep.subr.mxu0 %v328_v11 }
  0x4d   :  { %295 = vmatpush2.msra.mxu1 %v200_v27  ;;  %509 = vmatpush3.msra.mxu0 %v312_v12 }
  0x4e   :  { %296 = vmatprep.subr.mxu1 %v199_v28  ;;  %510 = vmatprep.subr.mxu0 %v327_v13 }
  0x4f   :  { %297 = vmatpush2.msra.mxu1 %v198_v29  ;;  %511 = vmatpush3.msra.mxu0 %v311_v14 }
  0x50   :  { %298 = vmatprep.subr.mxu1 %v197_v30 }
  0x51   :  { %299 = vmatpush2.msra.mxu1 %v196_v31 }
  0x52   :  { %300 = vmatprep.subr.mxu1 %v195_v32 }
  0x53   :  { %301 = vmatpush2.msra.mxu1 %v194_v33 }
  0xef   :  { %v155_v53 = vpop.f32.mrf.mxu0 }
  0xf0   :  { %v156_v54 = vadd.f32 %v155_v53, %v82_v51 }
  0xf1   :  { %v157_v55 = vpop.f32.mrf.mxu0 }
  0xf2   :  { %v158_v56 = vadd.f32 %v157_v55, %v86_v52 }
  0xf4   :  { %523 = vtanh.f32 %v158_v56 }
  0xf5   :  { %525 = vtanh.f32 %v156_v54 }
 0x101   :  { %v524_v57 = vpop.eup %523 }
 0x102   :  { %v526_v58 = vpop.eup %525  ;;  %302 = vmatprep.mubr.f32.mxu1 %v524_v57 }
 0x103   :  { %303 = vmatmul.mubr.f32.vlgmr.msra.gmra.mxu1 %v526_v58 }
 0x1c3   :  { %v304_v18 = vpop.f32.mrf.mxu1 }
 0x1c4   :  { %v305_v19 = vadd.f32 %v304_v18, %v231_v16 }
 0x1c5   :  { %v306_v20 = vpop.f32.mrf.mxu1 }
 0x1c6   :  { %v307_v21 = vadd.f32 %v306_v20, %v235_v17 }
 0x1c8   :  { %527 = vtanh.f32 %v307_v21 }
 0x1c9   :  { %529 = vtanh.f32 %v305_v19 }
 0x1d5   :  { %v528_v22 = vpop.eup %527 }
 0x1d6   :  { %v530_v23 = vpop.eup %529  ;;  %408 = vmatprep.mubr.f32.mxu0 %v528_v22 }
 0x1d7   :  { %409 = vmatmul.mubr.f32.vlgmr.msra.gmra.mxu0 %v530_v23 }
 0x297   :  { %v512_v24 = vpop.f32.mrf.mxu0 }
 0x299   :  { %v513_v26 = vpop.f32.mrf.mxu0 }
 0x29a   :  { %v514_v27 = vadd.f32 %v513_v26, %v512_v24 }
 0x29c   :  { %v411_v28 = vadd.f32 %v514_v27, %v343_v25 }
 0x29e   :  { %415 = vrot.lane.b32.xlu0 %v411_v28, %s585_s5  ;;  %v449_v38 = vrot.slane %v411_v28, %v448_v37  ;;  %v440_v51 = vsel %vm439_vm1, %v411_v28, 0.0 }
 0x2a0   :  { %v456_v40 = vrot.slane %v449_v38, %v448_v37 }
 0x310   :  { %v416_v29 = vpop.permute.xlu0 %415 }
 0x311   :  { %v418_v30 = vmax.f32 %v411_v28, %v416_v29 }
 0x313   :  { %424 = vrot.lane.b32.xlu0 %v418_v30, %s586_s23  ;;  %v419_v41 = vsub.f32 %v411_v28, %v418_v30 }
 0x315   :  { %v420_v42 = vmul.f32 1.442695, %v419_v41 }
 0x385   :  { %v425_v31 = vpop.permute.xlu0 %424 }
 0x386   :  { %v427_v32 = vsub.f32 %v411_v28, %v425_v31 }
 0x388   :  { %v428_v33 = vmul.f32 1.442695, %v427_v32 }
 0x38a   :  { %531 = vpow2.f32 %v428_v33 }
 0x38b   :  { %533 = vpow2.f32 %v420_v42 }
 0x397   :  { %v532_v39 = vpop.eup %531 }
 0x398   :  { %431 = vrot.lane.b32.xlu1 %v532_v39, %s585_s5  ;;  %v534_v43 = vpop.eup %533 }
 0x39c   :  { %457 = vrot.lane.b32.xlu1 %v456_v40, %s585_s5 }
 0x40a   :  { %v432_v44 = vpop.permute.xlu1 %431 }
 0x40b   :  { %v434_v45 = vadd.f32 %v534_v43, %v432_v44 }
 0x40d   :  { %535 = vlog2.f32 %v434_v45 }
 0x40e   :  { %v458_v48 = vpop.permute.xlu1 %457 }
 0x40f   :  { %v460_v49 = vsel %vm442_vm0, %v458_v48, 0.0 }
 0x410   :  { %v461_v53 = vadd.f32 %v460_v49, %v440_v51 }
 0x41a   :  { %v536_v47 = vpop.eup %535 }
 0x41b   :  { %v436_v50 = vmul.f32 0.6931472, %v536_v47 }
 0x41d   :  { %v437_v52 = vadd.f32 %v436_v50, %v418_v30 }
 0x41f   :  { %v462_v54 = vsub.f32 %v437_v52, %v461_v53 }
 0x421   :  { %464 = vst.msk [vmem:[#allocation5] sm:$0x1] %vm463_vm2, %v462_v54 }
 0x422   :  { %568 = shalt.err (!%p565_p9)
}
 0x423   :  { %474 = dma.vmem_to_hbm [thread:$0]  %s472_s26, 16, %s860_s8, [#allocation4]  }
 0x424   :  { %579 = dma.done.wait [#allocation4], 16  }
 0x425   :  { %580 = vsyncadd [#allocation4], 4294967280 }
 0x426   :  { %478 = vsyncpa [#allocation3], 1 }
 0x427   :  { %479 = vsyncpa [#allocation4], 1 }

</bundles_post_ra>
